<compile_context>
chip_gen: v7x
topology: tpu7x:2x2x1
jax: 0.10.0
libtpu: 0.0.40
codegen_flags: <defaults>
</compile_context>

<pallas_src>
import numpy as np
import jax
import jax.numpy as jnp
from jax.experimental import pallas as pl
from jax.experimental.pallas import tpu as pltpu


# ConvTranspose2d(k=4, s=2, p=1): output row 2h+p reads input row h+dr with tap kh:
#   p=0: (kh=1, dr=0), (kh=3, dr=-1);   p=1: (kh=0, dr=+1), (kh=2, dr=0)
# (identical mapping for the column / q / kw / dc direction).
_TAPS = ([(1, 0), (3, -1)], [(0, 1), (2, 0)])
_SHIFTS = [(dr, dc) for dr in (-1, 0, 1) for dc in (-1, 0, 1)]   # 9 distinct shifts
_PAD_K = 8                                                       # bias + pad rows (8-aligned)


def build_fused_params(w_r, w_i, b_r, b_i, dot_dtype=jnp.bfloat16):
    """One-time parameter prep (pure numpy; hoisted out of the hot path).

    Returns fused matrix A of shape (8*Cout, 18*Cin + 8):
      rows    m = ((p*2 + q)*2 + reim_out)*Cout + cout     (4 phases x re/im x Cout)
      columns k = shift*2*Cin + reim_in*Cin + cin           (9 shifts x re/im x Cin)
      column 18*Cin is the folded bias (X supplies a ones row there);
      columns 18*Cin+1 .. +7 are zero padding for 8-row scratch alignment.
    apply_complex:  re = Wr*xr - Wi*xi + (br - bi),  im = Wi*xr + Wr*xi + (br + bi).
    """
    w_r = np.asarray(w_r, np.float32); w_i = np.asarray(w_i, np.float32)
    b_r = np.asarray(b_r, np.float32); b_i = np.asarray(b_i, np.float32)
    Cin, Cout = w_r.shape[0], w_r.shape[1]
    K = 18 * Cin
    A = np.zeros((8 * Cout, K + _PAD_K), np.float32)
    for p in range(2):
        for q in range(2):
            bm = (p * 2 + q) * 2 * Cout
            for kh, dr in _TAPS[p]:
                for kw, dc in _TAPS[q]:
                    s = (dr + 1) * 3 + (dc + 1)
                    bk = s * 2 * Cin
                    wr_t = w_r[:, :, kh, kw].T      # (Cout, Cin)
                    wi_t = w_i[:, :, kh, kw].T
                    A[bm:bm + Cout,            bk:bk + Cin]           = wr_t
                    A[bm:bm + Cout,            bk + Cin:bk + 2 * Cin] = -wi_t
                    A[bm + Cout:bm + 2 * Cout, bk:bk + Cin]           = wi_t
                    A[bm + Cout:bm + 2 * Cout, bk + Cin:bk + 2 * Cin] = wr_t
    # folded bias column (re bias = br - bi, im bias = br + bi, repeated per phase)
    A[:, K] = np.tile(np.concatenate([b_r - b_i, b_r + b_i]), 4)
    return jnp.asarray(A, dot_dtype)


def build_shift_masks(H, W):
    """(9, H*W) 0/1 masks: validity of each (dr, dc) shifted read (zero padding)."""
    hh, ww = np.meshgrid(np.arange(H), np.arange(W), indexing="ij")
    rows = []
    for dr, dc in _SHIFTS:
        valid = (hh + dr >= 0) & (hh + dr < H) & (ww + dc >= 0) & (ww + dc < W)
        rows.append(valid.reshape(-1))
    return jnp.asarray(np.stack(rows).astype(np.float32))


def _pick_batch_tile(N):
    """Largest divisor of N <= 8 that still leaves >= 2 grid steps (keeps both
    TensorCores busy on v7x); at N == 1 there is nothing to split."""
    best = 1
    for d in range(1, min(N, 8) + 1):
        if N % d == 0 and (N == 1 or N // d >= 2):
            best = d
    return best


@jax.jit
def complex_up_block_elu(x_re, x_im, A, masks):
    """x_*: (N, Cin, H, W) f32.  A: fused weight from build_fused_params (its
    dtype selects the MXU operand precision).  masks: (9, H*W) f32.
    Returns (out_re, out_im), each (N, Cout, 2H, 2W) f32."""
    N, Cin, H, W = x_re.shape
    HW = H * W
    Cout = A.shape[0] // 8
    K = 18 * Cin
    Kp = K + _PAD_K
    Bt = _pick_batch_tile(N)            # images per grid step
    L = Bt * HW                         # lane columns per fused dot

    # Free reshapes (contiguous NCHW): spatial goes onto the lane axis.
    xr = x_re.reshape(N, Cin, HW).astype(jnp.float32)
    xi = x_im.reshape(N, Cin, HW).astype(jnp.float32)

    def kernel(xr_ref, xi_ref, a_ref, m_ref, o_ref, x_sc):
        # Bias / pad rows of the im2col scratch: the ones row feeds the folded
        # bias column of A; the remaining pad rows multiply zero weights.
        x_sc[K:Kp, :] = jnp.ones((Kp - K, L), x_sc.dtype)

        # Build X (Kp, Bt*HW): per image, 9 lane-rolled copies of the (re, im)
        # channel stack.  Rolls run on the XLU; the masks zero exactly the lanes
        # whose shifted read falls outside the image, which also makes the
        # per-image layout safe under multi-image batching.  Slab math stays
        # f32 (v5e has no bf16 VALU); only the store casts to the dot dtype.
        for b in range(Bt):
            xb = jnp.concatenate([xr_ref[b], xi_ref[b]], axis=0)     # (2*Cin, HW)
            for s, (dr, dc) in enumerate(_SHIFTS):
                d = dr * W + dc
                if d == 0:
                    val = xb
                else:
                    val = pltpu.roll(xb, shift=(-d) % HW, axis=1) * m_ref[s:s + 1, :]
                x_sc[s * 2 * Cin:(s + 1) * 2 * Cin, b * HW:(b + 1) * HW] = (
                    val.astype(x_sc.dtype))

        # Single fused MXU pass: all phases, all taps, complex cross terms and
        # bias, for all Bt images at once.  f32 accumulation.
        acc = jnp.dot(a_ref[...], x_sc[...], preferred_element_type=jnp.float32)

        # complex ELU: elu(re) + i*elu(im) -> elementwise on every fused row.
        # exp lands on the EUP slot; clamp keeps the dead branch finite.
        act = jnp.where(acc > 0.0, acc, jnp.exp(jnp.minimum(acc, 0.0)) - 1.0)

        # Lane-dense (8*Cout, HW) stores (HW is a multiple of 128 here).
        for b in range(Bt):
            o_ref[b] = act[:, b * HW:(b + 1) * HW]

    out = pl.pallas_call(
        kernel,
        out_shape=jax.ShapeDtypeStruct((N, 8 * Cout, HW), jnp.float32),
        grid_spec=pltpu.PrefetchScalarGridSpec(
            num_scalar_prefetch=0,
            grid=(N // Bt,),
            in_specs=[
                pl.BlockSpec((Bt, Cin, HW), lambda n: (n, 0, 0)),
                pl.BlockSpec((Bt, Cin, HW), lambda n: (n, 0, 0)),
                pl.BlockSpec((8 * Cout, Kp), lambda n: (0, 0)),
                pl.BlockSpec((9, HW), lambda n: (0, 0)),
            ],
            out_specs=pl.BlockSpec((Bt, 8 * Cout, HW), lambda n: (n, 0, 0)),
            scratch_shapes=[pltpu.VMEM((Kp, L), A.dtype)],
        ),
        # Working set here is tiny (<1 MiB).  For production H,W on v7x (64 MiB
        # physical VMEM) add a lane-axis grid dim and set vmem_limit_bytes.
        compiler_params=pltpu.CompilerParams(dimension_semantics=("parallel",)),
    )(xr, xi, A, masks)

    # Phase de-interleave: rows m = (p, q, reim, cout), lanes = (h, w)
    #   -> (N, reim, Cout, 2H, 2W).
    # TODO(synk): in a full model fuse this small output-sized transpose into the
    # downstream consumer (or move it in-kernel with strided stores) to save one
    # output-sized HBM pass; kept here to preserve lane-dense kernel stores.
    y = out.reshape(N, 2, 2, 2, Cout, H, W)            # (n, p, q, ro, co, h, w)
    y = jnp.transpose(y, (0, 3, 4, 5, 1, 6, 2))        # (n, ro, co, h, p, w, q)
    y = y.reshape(N, 2, Cout, 2 * H, 2 * W)
    return y[:, 0], y[:, 1]


def _ref_conv_transpose(x, w, b):
    """Pure-JAX reference for PyTorch ConvTranspose2d(k=4, s=2, p=1), NCHW in/out."""
    w_flip = w[:, :, ::-1, ::-1]
    w_hwio = jnp.transpose(w_flip, (2, 3, 0, 1))
    x_nhwc = jnp.transpose(x, (0, 2, 3, 1))
    y = jax.lax.conv_general_dilated(
        x_nhwc, w_hwio, window_strides=(1, 1),
        padding=((2, 2), (2, 2)), lhs_dilation=(2, 2),
        dimension_numbers=("NHWC", "HWIO", "NHWC"))
    y = y + b[None, None, None, :]
    return jnp.transpose(y, (0, 3, 1, 2))


if __name__ == "__main__":
    key = jax.random.PRNGKey(0)
    N, Cin, Cout, H, W = 4, 4, 4, 16, 16        # N=4 -> B_t=2 images per grid step
    k = jax.random.split(key, 6)

    x_re = jax.random.normal(k[0], (N, Cin, H, W), jnp.float32)
    x_im = jax.random.normal(k[1], (N, Cin, H, W), jnp.float32)

    # deterministic PyTorch-style uniform init for ConvTranspose2d weights/biases
    lim = 1.0 / np.sqrt(Cin * 4 * 4)
    w_r = jax.random.uniform(k[2], (Cin, Cout, 4, 4), jnp.float32, -lim, lim)
    w_i = jax.random.uniform(k[3], (Cin, Cout, 4, 4), jnp.float32, -lim, lim)
    b_r = jax.random.uniform(k[4], (Cout,), jnp.float32, -lim, lim)
    b_i = jax.random.uniform(k[5], (Cout,), jnp.float32, -lim, lim)

    masks = build_shift_masks(H, W)             # one-time, numpy

    # Pure-JAX reference of the PyTorch semantics (apply_complex ConvTranspose2d
    # followed by complex ELU).
    ref_re = jax.nn.elu(_ref_conv_transpose(x_re, w_r, b_r)
                        - _ref_conv_transpose(x_im, w_i, b_i))
    ref_im = jax.nn.elu(_ref_conv_transpose(x_im, w_r, b_r)
                        + _ref_conv_transpose(x_re, w_i, b_i))

    # 1) f32 dot operands: tight correctness check.
    A32 = build_fused_params(w_r, w_i, b_r, b_i, dot_dtype=jnp.float32)
    y_re, y_im = complex_up_block_elu(x_re, x_im, A32, masks)
    jax.block_until_ready((y_re, y_im))
    assert y_re.shape == (N, Cout, 2 * H, 2 * W) and y_im.shape == (N, Cout, 2 * H, 2 * W)
    assert np.allclose(np.asarray(y_re), np.asarray(ref_re), atol=2e-4, rtol=2e-4)
    assert np.allclose(np.asarray(y_im), np.asarray(ref_im), atol=2e-4, rtol=2e-4)

    # 2) bf16 dot operands (v6e/v7x fast path; f32 accumulation): looser tolerance.
    A16 = build_fused_params(w_r, w_i, b_r, b_i, dot_dtype=jnp.bfloat16)
    yb_re, yb_im = complex_up_block_elu(x_re, x_im, A16, masks)
    jax.block_until_ready((yb_re, yb_im))
    assert np.allclose(np.asarray(yb_re), np.asarray(ref_re), atol=3e-2, rtol=3e-2)
    assert np.allclose(np.asarray(yb_im), np.asarray(ref_im), atol=3e-2, rtol=3e-2)

    print("KERNEL_OK")
</pallas_src>

<mosaic_0001>
module attributes {stable_mosaic.version = 11 : i64} {
  func.func @kernel(%arg0: i32, %arg1: memref<2x4x256xf32, #tpu.memory_space<vmem>>, %arg2: memref<2x4x256xf32, #tpu.memory_space<vmem>>, %arg3: memref<32x80xf32, #tpu.memory_space<vmem>>, %arg4: memref<9x256xf32, #tpu.memory_space<vmem>>, %arg5: memref<2x32x256xf32, #tpu.memory_space<vmem>>, %arg6: memref<80x512xf32, #tpu.memory_space<vmem>>) attributes {dimension_semantics = [#tpu.dimension_semantics<parallel>], iteration_bounds = array<i64: 2>, scalar_prefetch = 0 : i64, scratch_operands = 1 : i64, tpu.core_type = #tpu.core_type<tc>, window_params = [{transform_indices = @transform_0, window_bounds = array<i64: 2, 4, 256>}, {transform_indices = @transform_1, window_bounds = array<i64: 2, 4, 256>}, {pipeline_mode = #tpu.pipeline_mode<synchronous>, transform_indices = @transform_2, window_bounds = array<i64: 32, 80>}, {pipeline_mode = #tpu.pipeline_mode<synchronous>, transform_indices = @transform_3, window_bounds = array<i64: 9, 256>}, {transform_indices = @transform_4, window_bounds = array<i64: 2, 32, 256>}]} {
    %cst = arith.constant 1.000000e+00 : f32
    %0 = vector.broadcast %cst : f32 to vector<8x512xf32>
    %c72 = arith.constant 72 : index
    %c0 = arith.constant 0 : index
    %1 = vector.load %arg6[%c72, %c0] : memref<80x512xf32, #tpu.memory_space<vmem>>, vector<8x512xf32>
    tpu.vector_store %arg6[%c72, %c0], %0 {strides = array<i32>} : memref<80x512xf32, #tpu.memory_space<vmem>>, vector<8x512xf32>,
    %c0_0 = arith.constant 0 : index
    %c0_1 = arith.constant 0 : index
    %c0_2 = arith.constant 0 : index
    %2 = vector.load %arg1[%c0_0, %c0_1, %c0_2] : memref<2x4x256xf32, #tpu.memory_space<vmem>>, vector<1x4x256xf32>
    %3 = vector.shape_cast %2 : vector<1x4x256xf32> to vector<4x256xf32>
    %c0_3 = arith.constant 0 : index
    %c0_4 = arith.constant 0 : index
    %c0_5 = arith.constant 0 : index
    %4 = vector.load %arg2[%c0_3, %c0_4, %c0_5] : memref<2x4x256xf32, #tpu.memory_space<vmem>>, vector<1x4x256xf32>
    %5 = vector.shape_cast %4 : vector<1x4x256xf32> to vector<4x256xf32>
    %6 = tpu.concatenate %3, %5 in 0 : vector<4x256xf32>, vector<4x256xf32> -> vector<8x256xf32>
    %c17_i32 = arith.constant 17 : i32
    %7 = tpu.dynamic_rotate %6 by %c17_i32 dim 1 : vector<8x256xf32>, i32 -> vector<8x256xf32>
    %c0_6 = arith.constant 0 : index
    %c0_7 = arith.constant 0 : index
    %8 = vector.load %arg4[%c0_6, %c0_7] : memref<9x256xf32, #tpu.memory_space<vmem>>, vector<1x256xf32>
    %9 = vector.broadcast %8 : vector<1x256xf32> to vector<8x256xf32>
    %10 = arith.mulf %7, %9 : vector<8x256xf32>
    %c0_8 = arith.constant 0 : index
    %c0_9 = arith.constant 0 : index
    %11 = vector.load %arg6[%c0_8, %c0_9] : memref<80x512xf32, #tpu.memory_space<vmem>>, vector<8x256xf32>
    tpu.vector_store %arg6[%c0_8, %c0_9], %10 {strides = array<i32>} : memref<80x512xf32, #tpu.memory_space<vmem>>, vector<8x256xf32>,
    %c16_i32 = arith.constant 16 : i32
    %12 = tpu.dynamic_rotate %6 by %c16_i32 dim 1 : vector<8x256xf32>, i32 -> vector<8x256xf32>
    %c1 = arith.constant 1 : index
    %c0_10 = arith.constant 0 : index
    %13 = vector.load %arg4[%c1, %c0_10] : memref<9x256xf32, #tpu.memory_space<vmem>>, vector<1x256xf32>
    %14 = vector.broadcast %13 : vector<1x256xf32> to vector<8x256xf32>
    %15 = arith.mulf %12, %14 : vector<8x256xf32>
    %c8 = arith.constant 8 : index
    %c0_11 = arith.constant 0 : index
    %16 = vector.load %arg6[%c8, %c0_11] : memref<80x512xf32, #tpu.memory_space<vmem>>, vector<8x256xf32>
    tpu.vector_store %arg6[%c8, %c0_11], %15 {strides = array<i32>} : memref<80x512xf32, #tpu.memory_space<vmem>>, vector<8x256xf32>,
    %c15_i32 = arith.constant 15 : i32
    %17 = tpu.dynamic_rotate %6 by %c15_i32 dim 1 : vector<8x256xf32>, i32 -> vector<8x256xf32>
    %c2 = arith.constant 2 : index
    %c0_12 = arith.constant 0 : index
    %18 = vector.load %arg4[%c2, %c0_12] : memref<9x256xf32, #tpu.memory_space<vmem>>, vector<1x256xf32>
    %19 = vector.broadcast %18 : vector<1x256xf32> to vector<8x256xf32>
    %20 = arith.mulf %17, %19 : vector<8x256xf32>
    %c16 = arith.constant 16 : index
    %c0_13 = arith.constant 0 : index
    %21 = vector.load %arg6[%c16, %c0_13] : memref<80x512xf32, #tpu.memory_space<vmem>>, vector<8x256xf32>
    tpu.vector_store %arg6[%c16, %c0_13], %20 {strides = array<i32>} : memref<80x512xf32, #tpu.memory_space<vmem>>, vector<8x256xf32>,
    %c1_i32 = arith.constant 1 : i32
    %22 = tpu.dynamic_rotate %6 by %c1_i32 dim 1 : vector<8x256xf32>, i32 -> vector<8x256xf32>
    %c3 = arith.constant 3 : index
    %c0_14 = arith.constant 0 : index
    %23 = vector.load %arg4[%c3, %c0_14] : memref<9x256xf32, #tpu.memory_space<vmem>>, vector<1x256xf32>
    %24 = vector.broadcast %23 : vector<1x256xf32> to vector<8x256xf32>
    %25 = arith.mulf %22, %24 : vector<8x256xf32>
    %c24 = arith.constant 24 : index
    %c0_15 = arith.constant 0 : index
    %26 = vector.load %arg6[%c24, %c0_15] : memref<80x512xf32, #tpu.memory_space<vmem>>, vector<8x256xf32>
    tpu.vector_store %arg6[%c24, %c0_15], %25 {strides = array<i32>} : memref<80x512xf32, #tpu.memory_space<vmem>>, vector<8x256xf32>,
    %c32 = arith.constant 32 : index
    %c0_16 = arith.constant 0 : index
    %27 = vector.load %arg6[%c32, %c0_16] : memref<80x512xf32, #tpu.memory_space<vmem>>, vector<8x256xf32>
    tpu.vector_store %arg6[%c32, %c0_16], %6 {strides = array<i32>} : memref<80x512xf32, #tpu.memory_space<vmem>>, vector<8x256xf32>,
    %c255_i32 = arith.constant 255 : i32
    %28 = tpu.dynamic_rotate %6 by %c255_i32 dim 1 : vector<8x256xf32>, i32 -> vector<8x256xf32>
    %c5 = arith.constant 5 : index
    %c0_17 = arith.constant 0 : index
    %29 = vector.load %arg4[%c5, %c0_17] : memref<9x256xf32, #tpu.memory_space<vmem>>, vector<1x256xf32>
    %30 = vector.broadcast %29 : vector<1x256xf32> to vector<8x256xf32>
    %31 = arith.mulf %28, %30 : vector<8x256xf32>
    %c40 = arith.constant 40 : index
    %c0_18 = arith.constant 0 : index
    %32 = vector.load %arg6[%c40, %c0_18] : memref<80x512xf32, #tpu.memory_space<vmem>>, vector<8x256xf32>
    tpu.vector_store %arg6[%c40, %c0_18], %31 {strides = array<i32>} : memref<80x512xf32, #tpu.memory_space<vmem>>, vector<8x256xf32>,
    %c241_i32 = arith.constant 241 : i32
    %33 = tpu.dynamic_rotate %6 by %c241_i32 dim 1 : vector<8x256xf32>, i32 -> vector<8x256xf32>
    %c6 = arith.constant 6 : index
    %c0_19 = arith.constant 0 : index
    %34 = vector.load %arg4[%c6, %c0_19] : memref<9x256xf32, #tpu.memory_space<vmem>>, vector<1x256xf32>
    %35 = vector.broadcast %34 : vector<1x256xf32> to vector<8x256xf32>
    %36 = arith.mulf %33, %35 : vector<8x256xf32>
    %c48 = arith.constant 48 : index
    %c0_20 = arith.constant 0 : index
    %37 = vector.load %arg6[%c48, %c0_20] : memref<80x512xf32, #tpu.memory_space<vmem>>, vector<8x256xf32>
    tpu.vector_store %arg6[%c48, %c0_20], %36 {strides = array<i32>} : memref<80x512xf32, #tpu.memory_space<vmem>>, vector<8x256xf32>,
    %c240_i32 = arith.constant 240 : i32
    %38 = tpu.dynamic_rotate %6 by %c240_i32 dim 1 : vector<8x256xf32>, i32 -> vector<8x256xf32>
    %c7 = arith.constant 7 : index
    %c0_21 = arith.constant 0 : index
    %39 = vector.load %arg4[%c7, %c0_21] : memref<9x256xf32, #tpu.memory_space<vmem>>, vector<1x256xf32>
    %40 = vector.broadcast %39 : vector<1x256xf32> to vector<8x256xf32>
    %41 = arith.mulf %38, %40 : vector<8x256xf32>
    %c56 = arith.constant 56 : index
    %c0_22 = arith.constant 0 : index
    %42 = vector.load %arg6[%c56, %c0_22] : memref<80x512xf32, #tpu.memory_space<vmem>>, vector<8x256xf32>
    tpu.vector_store %arg6[%c56, %c0_22], %41 {strides = array<i32>} : memref<80x512xf32, #tpu.memory_space<vmem>>, vector<8x256xf32>,
    %c239_i32 = arith.constant 239 : i32
    %43 = tpu.dynamic_rotate %6 by %c239_i32 dim 1 : vector<8x256xf32>, i32 -> vector<8x256xf32>
    %c8_23 = arith.constant 8 : index
    %c0_24 = arith.constant 0 : index
    %44 = vector.load %arg4[%c8_23, %c0_24] : memref<9x256xf32, #tpu.memory_space<vmem>>, vector<1x256xf32>
    %45 = vector.broadcast %44 : vector<1x256xf32> to vector<8x256xf32>
    %46 = arith.mulf %43, %45 : vector<8x256xf32>
    %c64 = arith.constant 64 : index
    %c0_25 = arith.constant 0 : index
    %47 = vector.load %arg6[%c64, %c0_25] : memref<80x512xf32, #tpu.memory_space<vmem>>, vector<8x256xf32>
    tpu.vector_store %arg6[%c64, %c0_25], %46 {strides = array<i32>} : memref<80x512xf32, #tpu.memory_space<vmem>>, vector<8x256xf32>,
    %c1_26 = arith.constant 1 : index
    %c0_27 = arith.constant 0 : index
    %c0_28 = arith.constant 0 : index
    %48 = vector.load %arg1[%c1_26, %c0_27, %c0_28] : memref<2x4x256xf32, #tpu.memory_space<vmem>>, vector<1x4x256xf32>
    %49 = vector.shape_cast %48 : vector<1x4x256xf32> to vector<4x256xf32>
    %c1_29 = arith.constant 1 : index
    %c0_30 = arith.constant 0 : index
    %c0_31 = arith.constant 0 : index
    %50 = vector.load %arg2[%c1_29, %c0_30, %c0_31] : memref<2x4x256xf32, #tpu.memory_space<vmem>>, vector<1x4x256xf32>
    %51 = vector.shape_cast %50 : vector<1x4x256xf32> to vector<4x256xf32>
    %52 = tpu.concatenate %49, %51 in 0 : vector<4x256xf32>, vector<4x256xf32> -> vector<8x256xf32>
    %c17_i32_32 = arith.constant 17 : i32
    %53 = tpu.dynamic_rotate %52 by %c17_i32_32 dim 1 : vector<8x256xf32>, i32 -> vector<8x256xf32>
    %c0_33 = arith.constant 0 : index
    %c0_34 = arith.constant 0 : index
    %54 = vector.load %arg4[%c0_33, %c0_34] : memref<9x256xf32, #tpu.memory_space<vmem>>, vector<1x256xf32>
    %55 = vector.broadcast %54 : vector<1x256xf32> to vector<8x256xf32>
    %56 = arith.mulf %53, %55 : vector<8x256xf32>
    %c0_35 = arith.constant 0 : index
    %c256 = arith.constant 256 : index
    %57 = vector.load %arg6[%c0_35, %c256] : memref<80x512xf32, #tpu.memory_space<vmem>>, vector<8x256xf32>
    tpu.vector_store %arg6[%c0_35, %c256], %56 {strides = array<i32>} : memref<80x512xf32, #tpu.memory_space<vmem>>, vector<8x256xf32>,
    %c16_i32_36 = arith.constant 16 : i32
    %58 = tpu.dynamic_rotate %52 by %c16_i32_36 dim 1 : vector<8x256xf32>, i32 -> vector<8x256xf32>
    %c1_37 = arith.constant 1 : index
    %c0_38 = arith.constant 0 : index
    %59 = vector.load %arg4[%c1_37, %c0_38] : memref<9x256xf32, #tpu.memory_space<vmem>>, vector<1x256xf32>
    %60 = vector.broadcast %59 : vector<1x256xf32> to vector<8x256xf32>
    %61 = arith.mulf %58, %60 : vector<8x256xf32>
    %c8_39 = arith.constant 8 : index
    %c256_40 = arith.constant 256 : index
    %62 = vector.load %arg6[%c8_39, %c256_40] : memref<80x512xf32, #tpu.memory_space<vmem>>, vector<8x256xf32>
    tpu.vector_store %arg6[%c8_39, %c256_40], %61 {strides = array<i32>} : memref<80x512xf32, #tpu.memory_space<vmem>>, vector<8x256xf32>,
    %c15_i32_41 = arith.constant 15 : i32
    %63 = tpu.dynamic_rotate %52 by %c15_i32_41 dim 1 : vector<8x256xf32>, i32 -> vector<8x256xf32>
    %c2_42 = arith.constant 2 : index
    %c0_43 = arith.constant 0 : index
    %64 = vector.load %arg4[%c2_42, %c0_43] : memref<9x256xf32, #tpu.memory_space<vmem>>, vector<1x256xf32>
    %65 = vector.broadcast %64 : vector<1x256xf32> to vector<8x256xf32>
    %66 = arith.mulf %63, %65 : vector<8x256xf32>
    %c16_44 = arith.constant 16 : index
    %c256_45 = arith.constant 256 : index
    %67 = vector.load %arg6[%c16_44, %c256_45] : memref<80x512xf32, #tpu.memory_space<vmem>>, vector<8x256xf32>
    tpu.vector_store %arg6[%c16_44, %c256_45], %66 {strides = array<i32>} : memref<80x512xf32, #tpu.memory_space<vmem>>, vector<8x256xf32>,
    %c1_i32_46 = arith.constant 1 : i32
    %68 = tpu.dynamic_rotate %52 by %c1_i32_46 dim 1 : vector<8x256xf32>, i32 -> vector<8x256xf32>
    %c3_47 = arith.constant 3 : index
    %c0_48 = arith.constant 0 : index
    %69 = vector.load %arg4[%c3_47, %c0_48] : memref<9x256xf32, #tpu.memory_space<vmem>>, vector<1x256xf32>
    %70 = vector.broadcast %69 : vector<1x256xf32> to vector<8x256xf32>
    %71 = arith.mulf %68, %70 : vector<8x256xf32>
    %c24_49 = arith.constant 24 : index
    %c256_50 = arith.constant 256 : index
    %72 = vector.load %arg6[%c24_49, %c256_50] : memref<80x512xf32, #tpu.memory_space<vmem>>, vector<8x256xf32>
    tpu.vector_store %arg6[%c24_49, %c256_50], %71 {strides = array<i32>} : memref<80x512xf32, #tpu.memory_space<vmem>>, vector<8x256xf32>,
    %c32_51 = arith.constant 32 : index
    %c256_52 = arith.constant 256 : index
    %73 = vector.load %arg6[%c32_51, %c256_52] : memref<80x512xf32, #tpu.memory_space<vmem>>, vector<8x256xf32>
    tpu.vector_store %arg6[%c32_51, %c256_52], %52 {strides = array<i32>} : memref<80x512xf32, #tpu.memory_space<vmem>>, vector<8x256xf32>,
    %c255_i32_53 = arith.constant 255 : i32
    %74 = tpu.dynamic_rotate %52 by %c255_i32_53 dim 1 : vector<8x256xf32>, i32 -> vector<8x256xf32>
    %c5_54 = arith.constant 5 : index
    %c0_55 = arith.constant 0 : index
    %75 = vector.load %arg4[%c5_54, %c0_55] : memref<9x256xf32, #tpu.memory_space<vmem>>, vector<1x256xf32>
    %76 = vector.broadcast %75 : vector<1x256xf32> to vector<8x256xf32>
    %77 = arith.mulf %74, %76 : vector<8x256xf32>
    %c40_56 = arith.constant 40 : index
    %c256_57 = arith.constant 256 : index
    %78 = vector.load %arg6[%c40_56, %c256_57] : memref<80x512xf32, #tpu.memory_space<vmem>>, vector<8x256xf32>
    tpu.vector_store %arg6[%c40_56, %c256_57], %77 {strides = array<i32>} : memref<80x512xf32, #tpu.memory_space<vmem>>, vector<8x256xf32>,
    %c241_i32_58 = arith.constant 241 : i32
    %79 = tpu.dynamic_rotate %52 by %c241_i32_58 dim 1 : vector<8x256xf32>, i32 -> vector<8x256xf32>
    %c6_59 = arith.constant 6 : index
    %c0_60 = arith.constant 0 : index
    %80 = vector.load %arg4[%c6_59, %c0_60] : memref<9x256xf32, #tpu.memory_space<vmem>>, vector<1x256xf32>
    %81 = vector.broadcast %80 : vector<1x256xf32> to vector<8x256xf32>
    %82 = arith.mulf %79, %81 : vector<8x256xf32>
    %c48_61 = arith.constant 48 : index
    %c256_62 = arith.constant 256 : index
    %83 = vector.load %arg6[%c48_61, %c256_62] : memref<80x512xf32, #tpu.memory_space<vmem>>, vector<8x256xf32>
    tpu.vector_store %arg6[%c48_61, %c256_62], %82 {strides = array<i32>} : memref<80x512xf32, #tpu.memory_space<vmem>>, vector<8x256xf32>,
    %c240_i32_63 = arith.constant 240 : i32
    %84 = tpu.dynamic_rotate %52 by %c240_i32_63 dim 1 : vector<8x256xf32>, i32 -> vector<8x256xf32>
    %c7_64 = arith.constant 7 : index
    %c0_65 = arith.constant 0 : index
    %85 = vector.load %arg4[%c7_64, %c0_65] : memref<9x256xf32, #tpu.memory_space<vmem>>, vector<1x256xf32>
    %86 = vector.broadcast %85 : vector<1x256xf32> to vector<8x256xf32>
    %87 = arith.mulf %84, %86 : vector<8x256xf32>
    %c56_66 = arith.constant 56 : index
    %c256_67 = arith.constant 256 : index
    %88 = vector.load %arg6[%c56_66, %c256_67] : memref<80x512xf32, #tpu.memory_space<vmem>>, vector<8x256xf32>
    tpu.vector_store %arg6[%c56_66, %c256_67], %87 {strides = array<i32>} : memref<80x512xf32, #tpu.memory_space<vmem>>, vector<8x256xf32>,
    %c239_i32_68 = arith.constant 239 : i32
    %89 = tpu.dynamic_rotate %52 by %c239_i32_68 dim 1 : vector<8x256xf32>, i32 -> vector<8x256xf32>
    %c8_69 = arith.constant 8 : index
    %c0_70 = arith.constant 0 : index
    %90 = vector.load %arg4[%c8_69, %c0_70] : memref<9x256xf32, #tpu.memory_space<vmem>>, vector<1x256xf32>
    %91 = vector.broadcast %90 : vector<1x256xf32> to vector<8x256xf32>
    %92 = arith.mulf %89, %91 : vector<8x256xf32>
    %c64_71 = arith.constant 64 : index
    %c256_72 = arith.constant 256 : index
    %93 = vector.load %arg6[%c64_71, %c256_72] : memref<80x512xf32, #tpu.memory_space<vmem>>, vector<8x256xf32>
    tpu.vector_store %arg6[%c64_71, %c256_72], %92 {strides = array<i32>} : memref<80x512xf32, #tpu.memory_space<vmem>>, vector<8x256xf32>,
    %c0_73 = arith.constant 0 : index
    %c0_74 = arith.constant 0 : index
    %94 = vector.load %arg3[%c0_73, %c0_74] : memref<32x80xf32, #tpu.memory_space<vmem>>, vector<32x80xf32>
    %c0_75 = arith.constant 0 : index
    %c0_76 = arith.constant 0 : index
    %95 = vector.load %arg6[%c0_75, %c0_76] : memref<80x512xf32, #tpu.memory_space<vmem>>, vector<80x512xf32>
    %cst_77 = arith.constant dense<0.000000e+00> : vector<32x512xf32>
    %96 = tpu.matmul %94, %95, %cst_77 {dimension_numbers = #tpu.dot_dimension_numbers<[1], [0], [0], [1], [0, 0, 1, 1], [], []>} : vector<32x80xf32>, vector<80x512xf32>, vector<32x512xf32> -> vector<32x512xf32>
    %cst_78 = arith.constant 0.000000e+00 : f32
    %97 = vector.broadcast %cst_78 : f32 to vector<32x512xf32>
    %98 = arith.cmpf ogt, %96, %97 : vector<32x512xf32>
    %cst_79 = arith.constant 0.000000e+00 : f32
    %99 = vector.broadcast %cst_79 : f32 to vector<32x512xf32>
    %100 = arith.minimumf %96, %99 : vector<32x512xf32>
    %101 = math.exp %100 : vector<32x512xf32>
    %cst_80 = arith.constant 1.000000e+00 : f32
    %102 = vector.broadcast %cst_80 : f32 to vector<32x512xf32>
    %103 = arith.subf %101, %102 : vector<32x512xf32>
    %104 = arith.select %98, %96, %103 : vector<32x512xi1>, vector<32x512xf32>
    %105 = vector.extract_strided_slice %104 {offsets = [0, 0], sizes = [32, 256], strides = [1, 1]} : vector<32x512xf32> to vector<32x256xf32>
    %c0_81 = arith.constant 0 : index
    %c0_82 = arith.constant 0 : index
    %c0_83 = arith.constant 0 : index
    %106 = vector.load %arg5[%c0_81, %c0_82, %c0_83] : memref<2x32x256xf32, #tpu.memory_space<vmem>>, vector<1x32x256xf32>
    %107 = vector.shape_cast %106 : vector<1x32x256xf32> to vector<32x256xf32>
    %108 = vector.shape_cast %105 : vector<32x256xf32> to vector<1x32x256xf32>
    tpu.vector_store %arg5[%c0_81, %c0_82, %c0_83], %108 {strides = array<i32>} : memref<2x32x256xf32, #tpu.memory_space<vmem>>, vector<1x32x256xf32>,
    %109 = vector.extract_strided_slice %104 {offsets = [0, 256], sizes = [32, 256], strides = [1, 1]} : vector<32x512xf32> to vector<32x256xf32>
    %c1_84 = arith.constant 1 : index
    %c0_85 = arith.constant 0 : index
    %c0_86 = arith.constant 0 : index
    %110 = vector.load %arg5[%c1_84, %c0_85, %c0_86] : memref<2x32x256xf32, #tpu.memory_space<vmem>>, vector<1x32x256xf32>
    %111 = vector.shape_cast %110 : vector<1x32x256xf32> to vector<32x256xf32>
    %112 = vector.shape_cast %109 : vector<32x256xf32> to vector<1x32x256xf32>
    tpu.vector_store %arg5[%c1_84, %c0_85, %c0_86], %112 {strides = array<i32>} : memref<2x32x256xf32, #tpu.memory_space<vmem>>, vector<1x32x256xf32>,
    return
  }
  func.func @transform_0(%arg0: i32) -> (i32, i32, i32) {
    %c0_i32 = arith.constant 0 : i32
    %c0_i32_0 = arith.constant 0 : i32
    %c0_i32_1 = arith.constant 0 : i32
    return %arg0, %c0_i32, %c0_i32_0 : i32, i32, i32
  }
  func.func @transform_1(%arg0: i32) -> (i32, i32, i32) {
    %c0_i32 = arith.constant 0 : i32
    %c0_i32_0 = arith.constant 0 : i32
    %c0_i32_1 = arith.constant 0 : i32
    return %arg0, %c0_i32, %c0_i32_0 : i32, i32, i32
  }
  func.func @transform_2(%arg0: i32) -> (i32, i32) {
    %c0_i32 = arith.constant 0 : i32
    %c0_i32_0 = arith.constant 0 : i32
    %c0_i32_1 = arith.constant 0 : i32
    return %c0_i32, %c0_i32_0 : i32, i32
  }
  func.func @transform_3(%arg0: i32) -> (i32, i32) {
    %c0_i32 = arith.constant 0 : i32
    %c0_i32_0 = arith.constant 0 : i32
    %c0_i32_1 = arith.constant 0 : i32
    return %c0_i32, %c0_i32_0 : i32, i32
  }
  func.func @transform_4(%arg0: i32) -> (i32, i32, i32) {
    %c0_i32 = arith.constant 0 : i32
    %c0_i32_0 = arith.constant 0 : i32
    %c0_i32_1 = arith.constant 0 : i32
    return %arg0, %c0_i32, %c0_i32_0 : i32, i32, i32
  }
}

</mosaic_0001>

<bundles_post_ra>
// kernel: complex_up_block_elu.1
= control target key start
LH: loop header
LB: loop body
LE: loop exit
PB: predicated region body
PF: predicated region fallthrough
CT: control target
= control target key end

     0   :  { %9 = vsyncpa [#allocation4], 0  ;;  %s1760_s0 = inlined_call_operand.vmem [shape: f32[4,4,256], index: 0, kind: input, shape index: {}]   ;;  %s1761_s1 = inlined_call_operand.vmem [shape: f32[4,4,256], index: 1, kind: input, shape index: {}]   ;;  %s1762_s2 = inlined_call_operand.hbm [shape: f32[32,80], index: 2, kind: input, shape index: {}]   ;;  %s1763_s3 = inlined_call_operand.hbm [shape: f32[9,256], index: 3, kind: input, shape index: {}]   ;;  %s1764_s4 = inlined_call_operand.vmem [shape: f32[4,32,256], index: 4, kind: output, shape index: {}]  }
   0x1   :  { %10 = vsyncpa [#allocation6], 0  ;;  %s1390_s15 = smov 0  }
   0x2 LB: > { %s1349_s16 = smov [#allocation3]   ;;  %s1101_s18 = sadd.s32 4294967295, %s1347_s15   ;;  %s1347_s15 = sphi %s1390_s15, %s16_s15  }
   0x3   : > { %s153_s17 = sshll.u32 %s1349_s16, 4  ;;  %p1103_p0 = scmp.ge.s32.totalorder %s1347_s15, 1  ;;  %s154_s17 = int_to_ptr.vmem [resolvable:$true] %s153_s17 }
   0x4   : > { %p141_p1 = scmp.lt.s32.totalorder %s1347_s15, 3  ;;  %p1404_p3 = scmp.eq.s32.totalorder %s1101_s18, 0 }
   0x5   : > { %s1350_s21 = smov [#allocation5]   ;;  %s1277_s26 = scalar_lea.hbm %s1762_s2, 512 }
   0x6   : > { %p1398_p2 = pnand %p1103_p0, %p141_p1  ;;  %s166_s22 = sshll.u32 %s1350_s21, 4  ;;  %s1416_s22 = int_to_ptr.vmem [resolvable:$true] %s166_s22 }
   0x7   : > { %s1769_s20 = scalar_select %p1404_p3, 1, 0 }
   0x8   : > { %s1768_s19 = scalar_select %p1398_p2, 1, 0 }
   0x9   : > { %p1206_p4 = pneg %p1398_p2  ;;  %p1278_p6 = scmp.ne.s32.totalorder %s1762_s2, %s1277_s26 }
   0xa   : > { %p1284_p10 = scmp.lt.u32.totalorder %s1277_s26, %s1762_s2 }
   0xb   : > { %p1412_p5 = pnand %p1404_p3, %p1206_p4 }
   0xd   : > { %p1279_p7 = pneg %p1412_p5 }
   0xf   : > { %p1280_p8 = pnand %p1279_p7, %p1278_p6 }
  0x11   : > { %p1281_p9 = pneg %p1280_p8 }
  0x13   : > { %p1286_p11 = pnand %p1284_p10, %p1281_p9 }
  0x15   : > { %1289 = shalt.err (!%p1286_p11)
}
  0x16   : > { %s1290_s5 = scalar_lea.vmem %s154_s17, 512  ;;  %p1298_p1 = scmp.lt.s32.totalorder %s154_s17, %s154_s17 }
  0x17   : > { %p1291_p12 = scmp.ne.s32.totalorder %s154_s17, %s1290_s5  ;;  %p1299_p4 = scmp.lt.s32.totalorder %s1290_s5, %s1290_s5 }
  0x19   : > { %p1293_p13 = pnand %p1291_p12, %p1279_p7  ;;  %p1300_p3 = por %p1299_p4, %p1298_p1 }
  0x1b   : > { %p1294_p0 = pneg %p1293_p13 }
  0x1d   : > { %p1301_p2 = pnand %p1300_p3, %p1294_p0 }
  0x1f   : > { %1304 = shalt.err (!%p1301_p2)
}
  0x20   : > { %s1351_s6 = smov 128   ;;  %s1352_s7 = smov 8  }
  0x21   : > { %1209 = dma.hbm_to_vmem [thread:$0]  (!%p1412_p5), %s1762_s2, 512, %s154_s17, [#allocation4], %s1351_s6, %s1351_s6, %s1352_s7  }
  0x22   : > { %s1305_s12 = scalar_lea.hbm %s1763_s3, 512 }
  0x23   : > { %p1306_p6 = scmp.ne.s32.totalorder %s1763_s3, %s1305_s12  ;;  %p1312_p8 = scmp.lt.u32.totalorder %s1305_s12, %s1763_s3 }
  0x25   : > { %p1308_p2 = pnand %p1306_p6, %p1279_p7 }
  0x27   : > { %p1309_p3 = pneg %p1308_p2 }
  0x29   : > { %p1314_p9 = pnand %p1312_p8, %p1309_p3 }
  0x2b   : > { %1317 = shalt.err (!%p1314_p9)
}
  0x2c   : > { %s1318_s17 = scalar_lea.vmem %s1416_s22, 512  ;;  %p1326_p13 = scmp.lt.s32.totalorder %s1416_s22, %s1416_s22 }
  0x2d   : > { %p1319_p10 = scmp.ne.s32.totalorder %s1416_s22, %s1318_s17  ;;  %p1327_p0 = scmp.lt.s32.totalorder %s1318_s17, %s1318_s17 }
  0x2f   : > { %p1321_p11 = pnand %p1319_p10, %p1279_p7  ;;  %p1328_p1 = por %p1327_p0, %p1326_p13 }
  0x31   : > { %p1322_p12 = pneg %p1321_p11 }
  0x33   : > { %p1329_p4 = pnand %p1328_p1, %p1322_p12 }
  0x35   : > { %1332 = shalt.err (!%p1329_p4)
}
  0x36   : > { %s1353_s24 = smov 256   ;;  %s1354_s25 = smov 16  }
  0x37   : > { %1212 = dma.hbm_to_vmem [thread:$0]  (!%p1412_p5), %s1763_s3, 512, %s1416_s22, [#allocation6], %s1353_s24, %s1353_s24, %s1354_s25  }
  0x38   : > { %p1771_p6 = scmp.ne.s32.totalorder %s1768_s19, 0 }
  0x39   : > { %p1772_p7 = scmp.ne.s32.totalorder (!%p1771_p6), %s1769_s20, 0 }
  0x3a   : > { %202 = sbr.rel (%p1771_p6) target bundleno = 507 (0x1fb), region = 36 }
  0x41   : > { %1338 = dma.done.wait (%p1772_p7), [#allocation4], 512  }
  0x42   : > { %1340 = vsyncadd (%p1772_p7), [#allocation4], 4294966784 }
  0x43   : > { %1342 = dma.done.wait (%p1772_p7), [#allocation6], 512  }
  0x44   : > { %1344 = vsyncadd (%p1772_p7), [#allocation6], 4294966784  ;;  %s1110_s23 = sshll.u32 %s1101_s18, 1  ;;  %vm273_vm0 = vcmask 1043456   ;;  %s1355_s18 = smov 16   ;;  %v1362_v12 = vmov 0.0   ;;  %v280_v13 = vlaneseq }
  0x45   : > { %p241_p2 = scmp.lt.s32.totalorder %s1110_s23, 3  ;;  %s1356_s20 = smov 17   ;;  %782 = vmatprep.mubr.f32.mxu0 %v1362_v12  ;;  %871 = vmatprep.mubr.f32.mxu1 %v1362_v12  ;;  %v309_v18 = vld [vmem:[#allocation5 + $0x1] ss:$8 sm:$0x3]  ;;  %vm705_vm9 = vcmask 654336  }
  0x46   : > { %s1357_s7 = smov 15   ;;  %s1358_s8 = smov 1   ;;  %v288_v14 = vshrl.u32 %v280_v13, 7  ;;  %v1532_v15 = vand.u32 127, %v280_v13 }
  0x47   : > { %s1774_s23 = smov (!%p241_p2, %s1110_s23), 3  ;;  %s1359_s9 = smov 127   ;;  %v285_v19 = vld [vmem:[#allocation5] ss:$8 sm:$0x3] }
  0x48   : > { %s1155_s19 = sshll.u32 %s1774_s23, 3  ;;  %s1360_s10 = smov 113   ;;  %v1534_v16 = vsub.s32 0, %v288_v14  ;;  %v1536_v17 = vsub.s32 1, %v288_v14  ;;  %vm305_vm1 = vcmp.lt.s32.totalorder %v1532_v15, 16  ;;  %vm282_vm2 = vcmp.lt.s32.totalorder %v1532_v15, 17 }
  0x49   : > { %s245_s29 = scalar_lea.vmem %s1760_s0, %s1155_s19  ;;  %s252_s6 = scalar_lea.vmem %s1761_s1, %s1155_s19  ;;  %v489_v36 = vld [vmem:[#allocation5] ss:$8 sm:$0x3]  ;;  %v511_v37 = vld [vmem:[#allocation5 + $0x1] ss:$8 sm:$0x3] }
  0x4a   : > { %v265_v0 = vld [vmem:[%s245_s29] sm:$0xff]  ;;  %v1119_v4 = vld [vmem:[%s245_s29 + $0x8] sm:$0xff]  ;;  %s1361_s11 = smov 112   ;;  %s1363_s12 = smov 111   ;;  %v314_v22 = vrot.slane %v309_v18, %v1534_v16  ;;  %v290_v23 = vrot.slane %v285_v19, %v1534_v16  ;;  %v294_v24 = vrot.slane %v285_v19, %v1536_v17  ;;  %v318_v25 = vrot.slane %v309_v18, %v1536_v17 }
  0x4b   : > { %v266_v1 = vld [vmem:[%s252_s6] sm:$0xff]  ;;  %v268_v3 = vcombine.high %v265_v0, %v265_v0  ;;  %v1120_v5 = vld [vmem:[%s252_s6 + $0x8] sm:$0xff]  ;;  %v476_v8 = vcombine.high %v1119_v4, %v1119_v4  ;;  %v494_v42 = vrot.slane %v489_v36, %v1534_v16  ;;  %v516_v43 = vrot.slane %v511_v37, %v1534_v16  ;;  %s1157_s13 = sshll.u32 %s1774_s23, 6 }
  0x4c   : > { %v271_v2 = vcombine.low %v266_v1, %v266_v1  ;;  %v479_v9 = vcombine.low %v1120_v5, %v1120_v5  ;;  %v498_v44 = vrot.slane %v489_v36, %v1536_v17  ;;  %v520_v45 = vrot.slane %v511_v37, %v1536_v17  ;;  %v333_v54 = vld [vmem:[#allocation5 + $0x2] ss:$8 sm:$0x3]  ;;  %v357_v57 = vld [vmem:[#allocation5 + $0x3] ss:$8 sm:$0x3]  ;;  %s1702_s21 = scalar_lea.vmem %s1764_s4, %s1157_s13 }
  0x4d   : > { %v1492_v7 = vsel %vm273_vm0, %v268_v3, %v266_v1  ;;  %v1497_v10 = vsel %vm273_vm0, %v476_v8, %v1120_v5  ;;  %vm329_vm3 = vcmp.lt.s32.totalorder %v1532_v15, 15  ;;  %v338_v62 = vrot.slane %v333_v54, %v1534_v16 }
  0x4e   : > { %v1487_v6 = vsel %vm273_vm0, %v265_v0, %v271_v2  ;;  %v1500_v11 = vsel %vm273_vm0, %v1119_v4, %v479_v9  ;;  %v342_v63 = vrot.slane %v333_v54, %v1536_v17  ;;  %vm353_vm4 = vcmp.lt.s32.totalorder %v1532_v15, 1 }
  0x4f   : > { %301 = vrot.lane.b32.xlu1 %v1487_v6, %s1355_s18  ;;  %276 = vrot.lane.b32.xlu0 %v1487_v6, %s1356_s20  ;;  %v362_v0 = vrot.slane %v357_v57, %v1534_v16  ;;  %v366_v1 = vrot.slane %v357_v57, %v1536_v17  ;;  %vm379_vm5 = vcmp.lt.s32.totalorder %v1532_v15, 127  ;;  %vm403_vm6 = vcmp.lt.s32.totalorder %v1532_v15, 113 }
  0x50   : > { %vm427_vm7 = vcmp.lt.s32.totalorder %v1532_v15, 112  ;;  %vm451_vm8 = vcmp.lt.s32.totalorder %v1532_v15, 111  ;;  %v663_v15 = vld [vmem:[#allocation3 + $0x10] sm:$0xff] }
  0x53   : > { %303 = vrot.lane.b32.xlu1 %v1492_v7, %s1355_s18  ;;  %278 = vrot.lane.b32.xlu0 %v1492_v7, %s1356_s20 }
  0x57   : > { %485 = vrot.lane.b32.xlu1 %v1497_v10, %s1356_s20  ;;  %483 = vrot.lane.b32.xlu0 %v1500_v11, %s1356_s20 }
  0x5b   : > { %507 = vrot.lane.b32.xlu1 %v1497_v10, %s1355_s18  ;;  %505 = vrot.lane.b32.xlu0 %v1500_v11, %s1355_s18 }
  0x5f   : > { %327 = vrot.lane.b32.xlu1 %v1492_v7, %s1357_s7  ;;  %325 = vrot.lane.b32.xlu0 %v1487_v6, %s1357_s7 }
  0x63   : > { %351 = vrot.lane.b32.xlu1 %v1492_v7, %s1358_s8  ;;  %349 = vrot.lane.b32.xlu0 %v1487_v6, %s1358_s8 }
  0x67   : > { %529 = vrot.lane.b32.xlu1 %v1497_v10, %s1357_s7  ;;  %527 = vrot.lane.b32.xlu0 %v1500_v11, %s1357_s7 }
  0x6b   : > { %551 = vrot.lane.b32.xlu1 %v1497_v10, %s1358_s8  ;;  %549 = vrot.lane.b32.xlu0 %v1500_v11, %s1358_s8 }
  0x6f   : > { %377 = vrot.lane.b32.xlu1 %v1492_v7, %s1359_s9  ;;  %375 = vrot.lane.b32.xlu0 %v1487_v6, %s1359_s9 }
  0x73   : > { %575 = vrot.lane.b32.xlu1 %v1497_v10, %s1359_s9  ;;  %573 = vrot.lane.b32.xlu0 %v1500_v11, %s1359_s9 }
  0x77   : > { %401 = vrot.lane.b32.xlu1 %v1492_v7, %s1360_s10  ;;  %399 = vrot.lane.b32.xlu0 %v1487_v6, %s1360_s10 }
  0x7b   : > { %425 = vrot.lane.b32.xlu1 %v1492_v7, %s1361_s11  ;;  %423 = vrot.lane.b32.xlu0 %v1487_v6, %s1361_s11 }
  0x7f   : > { %597 = vrot.lane.b32.xlu1 %v1497_v10, %s1360_s10  ;;  %595 = vrot.lane.b32.xlu0 %v1500_v11, %s1360_s10 }
  0x83   : > { %619 = vrot.lane.b32.xlu1 %v1497_v10, %s1361_s11  ;;  %617 = vrot.lane.b32.xlu0 %v1500_v11, %s1361_s11 }
  0x87   : > { %449 = vrot.lane.b32.xlu1 %v1492_v7, %s1363_s12  ;;  %447 = vrot.lane.b32.xlu0 %v1487_v6, %s1363_s12 }
  0x8b   : > { %641 = vrot.lane.b32.xlu1 %v1497_v10, %s1363_s12  ;;  %639 = vrot.lane.b32.xlu0 %v1500_v11, %s1363_s12 }
  0xc1   : > { %v302_v20 = vpop.permute.xlu1 %301  ;;  %v277_v21 = vpop.permute.xlu0 %276 }
  0xc5   : > { %v304_v26 = vpop.permute.xlu1 %303  ;;  %v279_v27 = vpop.permute.xlu0 %278 }
  0xc6   : > { %v306_v28 = vsel %vm305_vm1, %v302_v20, %v304_v26  ;;  %v307_v29 = vsel %vm305_vm1, %v304_v26, %v302_v20  ;;  %v283_v30 = vsel %vm282_vm2, %v277_v21, %v279_v27  ;;  %v284_v31 = vsel %vm282_vm2, %v279_v27, %v277_v21  ;;  %v533_v20 = vld [vmem:[#allocation5 + $0x2] ss:$8 sm:$0x3]  ;;  %v555_v21 = vld [vmem:[#allocation5 + $0x3] ss:$8 sm:$0x3] }
  0xc7   : > { %v321_v32 = vmul.f32 %v314_v22, %v307_v29  ;;  %v297_v33 = vmul.f32 %v290_v23, %v284_v31  ;;  %v298_v34 = vmul.f32 %v294_v24, %v283_v30  ;;  %v322_v35 = vmul.f32 %v318_v25, %v306_v28  ;;  %v383_v30 = vld [vmem:[#allocation5 + $0x5] ss:$8 sm:$0x3] }
  0xc8   : > { %v538_v26 = vrot.slane %v533_v20, %v1534_v16  ;;  %v542_v27 = vrot.slane %v533_v20, %v1536_v17  ;;  %v560_v28 = vrot.slane %v555_v21, %v1534_v16  ;;  %v564_v29 = vrot.slane %v555_v21, %v1536_v17 }
  0xc9   : > { %v486_v38 = vpop.permute.xlu1 %485  ;;  %v484_v39 = vpop.permute.xlu0 %483  ;;  %v1158_v40 = vpack.c.bf16 %v322_v35, %v298_v34  ;;  %v1160_v41 = vpack.c.bf16 %v321_v32, %v297_v33  ;;  %v388_v37 = vrot.slane %v383_v30, %v1534_v16 }
  0xca   : > { %v487_v46 = vsel %vm282_vm2, %v484_v39, %v486_v38  ;;  %v488_v47 = vsel %vm282_vm2, %v486_v38, %v484_v39  ;;  %v392_v38 = vrot.slane %v383_v30, %v1536_v17 }
  0xcb   : > { %1159 = vmatprep.subr.bf16.mxu0 %v1158_v40  ;;  %v501_v52 = vmul.f32 %v494_v42, %v488_v47  ;;  %v502_v55 = vmul.f32 %v498_v44, %v487_v46 }
  0xcc   : > { %1161 = vmatpush1.bf16.msra.mxu0 %v1160_v41 }
  0xcd   : > { %v508_v48 = vpop.permute.xlu1 %507  ;;  %v506_v49 = vpop.permute.xlu0 %505 }
  0xce   : > { %v509_v50 = vsel %vm305_vm1, %v506_v49, %v508_v48  ;;  %v510_v51 = vsel %vm305_vm1, %v508_v48, %v506_v49 }
  0xcf   : > { %v523_v53 = vmul.f32 %v516_v43, %v510_v51  ;;  %v524_v56 = vmul.f32 %v520_v45, %v509_v50  ;;  %v579_v43 = vld [vmem:[#allocation5 + $0x5] ss:$8 sm:$0x3] }
  0xd1   : > { %v328_v58 = vpop.permute.xlu1 %327  ;;  %v326_v59 = vpop.permute.xlu0 %325  ;;  %v1178_v60 = vpack.c.bf16 %v524_v56, %v502_v55  ;;  %v1180_v61 = vpack.c.bf16 %v523_v53, %v501_v52  ;;  %v584_v52 = vrot.slane %v579_v43, %v1534_v16  ;;  %v588_v53 = vrot.slane %v579_v43, %v1536_v17 }
  0xd2   : > { %v330_v2 = vsel %vm329_vm3, %v326_v59, %v328_v58  ;;  %v331_v3 = vsel %vm329_vm3, %v328_v58, %v326_v59 }
  0xd3   : > { %1179 = vmatprep.subr.bf16.mxu1 %v1178_v60  ;;  %v345_v13 = vmul.f32 %v338_v62, %v331_v3  ;;  %v346_v14 = vmul.f32 %v342_v63, %v330_v2  ;;  %v407_v62 = vld [vmem:[#allocation5 + $0x6] ss:$8 sm:$0x3]  ;;  %v431_v63 = vld [vmem:[#allocation5 + $0x7] ss:$8 sm:$0x3] }
  0xd4   : > { %1181 = vmatpush1.bf16.msra.mxu1 %v1180_v61  ;;  %v412_v2 = vrot.slane %v407_v62, %v1534_v16  ;;  %v416_v3 = vrot.slane %v407_v62, %v1536_v17 }
  0xd5   : > { %v352_v4 = vpop.permute.xlu1 %351  ;;  %v350_v5 = vpop.permute.xlu0 %349 }
  0xd6   : > { %v354_v8 = vsel %vm353_vm4, %v350_v5, %v352_v4  ;;  %v355_v9 = vsel %vm353_vm4, %v352_v4, %v350_v5  ;;  %v436_v4 = vrot.slane %v431_v63, %v1534_v16  ;;  %v440_v5 = vrot.slane %v431_v63, %v1536_v17 }
  0xd7   : > { %v369_v18 = vmul.f32 %v362_v0, %v355_v9  ;;  %v370_v19 = vmul.f32 %v366_v1, %v354_v8 }
  0xd9   : > { %v530_v22 = vpop.permute.xlu1 %529  ;;  %v528_v23 = vpop.permute.xlu0 %527  ;;  %v1162_v24 = vpack.c.bf16 %v370_v19, %v346_v14  ;;  %v1164_v25 = vpack.c.bf16 %v369_v18, %v345_v13 }
  0xda   : > { %v531_v31 = vsel %vm329_vm3, %v528_v23, %v530_v22  ;;  %v532_v32 = vsel %vm329_vm3, %v530_v22, %v528_v23  ;;  %v601_v22 = vld [vmem:[#allocation5 + $0x6] ss:$8 sm:$0x3]  ;;  %v623_v23 = vld [vmem:[#allocation5 + $0x7] ss:$8 sm:$0x3] }
  0xdb   : > { %1163 = vmatprep.subr.bf16.mxu0 %v1162_v24  ;;  %v545_v39 = vmul.f32 %v538_v26, %v532_v32  ;;  %v546_v40 = vmul.f32 %v542_v27, %v531_v31  ;;  %v628_v30 = vrot.slane %v623_v23, %v1534_v16  ;;  %v632_v31 = vrot.slane %v623_v23, %v1536_v17  ;;  %v455_v32 = vld [vmem:[#allocation5 + $0x10] ss:$8 sm:$0x3] }
  0xdc   : > { %1165 = vmatpush1.bf16.msra.mxu0 %v1164_v25 }
  0xdd   : > { %v552_v33 = vpop.permute.xlu1 %551  ;;  %v550_v34 = vpop.permute.xlu0 %549 }
  0xde   : > { %v553_v35 = vsel %vm353_vm4, %v550_v34, %v552_v33  ;;  %v554_v36 = vsel %vm353_vm4, %v552_v33, %v550_v34 }
  0xdf   : > { %v567_v41 = vmul.f32 %v560_v28, %v554_v36  ;;  %v568_v42 = vmul.f32 %v564_v29, %v553_v35  ;;  %v606_v28 = vrot.slane %v601_v22, %v1534_v16  ;;  %v610_v29 = vrot.slane %v601_v22, %v1536_v17 }
  0xe1   : > { %v378_v44 = vpop.permute.xlu1 %377  ;;  %v376_v45 = vpop.permute.xlu0 %375  ;;  %v1182_v46 = vpack.c.bf16 %v568_v42, %v546_v40  ;;  %v1184_v47 = vpack.c.bf16 %v567_v41, %v545_v39  ;;  %v460_v39 = vrot.slane %v455_v32, %v1534_v16  ;;  %v464_v40 = vrot.slane %v455_v32, %v1536_v17 }
  0xe2   : > { %v380_v48 = vsel %vm379_vm5, %v376_v45, %v378_v44  ;;  %v381_v49 = vsel %vm379_vm5, %v378_v44, %v376_v45  ;;  %v645_v45 = vld [vmem:[#allocation5 + $0x10] ss:$8 sm:$0x3] }
  0xe3   : > { %v395_v50 = vmul.f32 %v388_v37, %v380_v48  ;;  %v396_v51 = vmul.f32 %v392_v38, %v381_v49  ;;  %1183 = vmatprep.subr.bf16.mxu1 %v1182_v46 }
  0xe4   : > { %1185 = vmatpush1.bf16.msra.mxu1 %v1184_v47 }
  0xe5   : > { %v576_v54 = vpop.permute.xlu1 %575  ;;  %v574_v55 = vpop.permute.xlu0 %573  ;;  %v1166_v56 = vpack.c.bf16 %v396_v51, %v1492_v7  ;;  %v1168_v57 = vpack.c.bf16 %v395_v50, %v1487_v6 }
  0xe6   : > { %v577_v58 = vsel %vm379_vm5, %v574_v55, %v576_v54  ;;  %v578_v59 = vsel %vm379_vm5, %v576_v54, %v574_v55  ;;  %v650_v54 = vrot.slane %v645_v45, %v1534_v16  ;;  %v654_v55 = vrot.slane %v645_v45, %v1536_v17 }
  0xe7   : > { %v591_v60 = vmul.f32 %v584_v52, %v577_v58  ;;  %v592_v61 = vmul.f32 %v588_v53, %v578_v59  ;;  %1167 = vmatprep.subr.bf16.mxu0 %v1166_v56  ;;  %v1364_v58 = vmov 1.0  }
  0xe8   : > { %1169 = vmatpush1.bf16.msra.mxu0 %v1168_v57 }
  0xe9   : > { %v402_v0 = vpop.permute.xlu1 %401  ;;  %v400_v1 = vpop.permute.xlu0 %399  ;;  %v1186_v7 = vpack.c.bf16 %v592_v61, %v1497_v10  ;;  %v1188_v6 = vpack.c.bf16 %v591_v60, %v1500_v11 }
  0xea   : > { %v404_v8 = vsel %vm403_vm6, %v400_v1, %v402_v0  ;;  %v405_v9 = vsel %vm403_vm6, %v402_v0, %v400_v1  ;;  %v661_v1 = vld [vmem:[#allocation3] sm:$0xff] }
  0xeb   : > { %1187 = vmatprep.subr.bf16.mxu1 %v1186_v7  ;;  %v419_v18 = vmul.f32 %v412_v2, %v404_v8  ;;  %v420_v19 = vmul.f32 %v416_v3, %v405_v9  ;;  %v662_v7 = vld [vmem:[#allocation3 + $0x8] sm:$0xff] }
  0xec   : > { %1189 = vmatpush1.bf16.msra.mxu1 %v1188_v6  ;;  %v664_v6 = vld [vmem:[#allocation3 + $0x18] sm:$0xff] }
  0xed   : > { %v426_v10 = vpop.permute.xlu1 %425  ;;  %v424_v11 = vpop.permute.xlu0 %423 }
  0xee   : > { %v428_v13 = vsel %vm427_vm7, %v424_v11, %v426_v10  ;;  %v429_v14 = vsel %vm427_vm7, %v426_v10, %v424_v11 }
  0xef   : > { %v443_v20 = vmul.f32 %v436_v4, %v428_v13  ;;  %v444_v21 = vmul.f32 %v440_v5, %v429_v14 }
  0xf1   : > { %v598_v24 = vpop.permute.xlu1 %597  ;;  %v596_v25 = vpop.permute.xlu0 %595  ;;  %v1170_v26 = vpack.c.bf16 %v444_v21, %v420_v19  ;;  %v1172_v27 = vpack.c.bf16 %v443_v20, %v419_v18 }
  0xf2   : > { %v599_v33 = vsel %vm403_vm6, %v596_v25, %v598_v24  ;;  %v600_v34 = vsel %vm403_vm6, %v598_v24, %v596_v25 }
  0xf3   : > { %1171 = vmatprep.subr.bf16.mxu0 %v1170_v26  ;;  %v613_v41 = vmul.f32 %v606_v28, %v599_v33  ;;  %v614_v42 = vmul.f32 %v610_v29, %v600_v34 }
  0xf4   : > { %1173 = vmatpush1.bf16.msra.mxu0 %v1172_v27 }
  0xf5   : > { %v620_v35 = vpop.permute.xlu1 %619  ;;  %v618_v36 = vpop.permute.xlu0 %617 }
  0xf6   : > { %v621_v37 = vsel %vm427_vm7, %v618_v36, %v620_v35  ;;  %v622_v38 = vsel %vm427_vm7, %v620_v35, %v618_v36 }
  0xf7   : > { %v635_v43 = vmul.f32 %v628_v30, %v621_v37  ;;  %v636_v44 = vmul.f32 %v632_v31, %v622_v38 }
  0xf9   : > { %v450_v46 = vpop.permute.xlu1 %449  ;;  %v448_v47 = vpop.permute.xlu0 %447  ;;  %v1190_v48 = vpack.c.bf16 %v636_v44, %v614_v42  ;;  %v1192_v49 = vpack.c.bf16 %v635_v43, %v613_v41 }
  0xfa   : > { %v452_v50 = vsel %vm451_vm8, %v448_v47, %v450_v46  ;;  %v453_v51 = vsel %vm451_vm8, %v450_v46, %v448_v47 }
  0xfb   : > { %v467_v52 = vmul.f32 %v460_v39, %v452_v50  ;;  %v468_v53 = vmul.f32 %v464_v40, %v453_v51  ;;  %1191 = vmatprep.subr.bf16.mxu1 %v1190_v48 }
  0xfc   : > { %1193 = vmatpush1.bf16.msra.mxu1 %v1192_v49 }
  0xfd   : > { %v642_v56 = vpop.permute.xlu1 %641  ;;  %v640_v57 = vpop.permute.xlu0 %639  ;;  %v1174_v59 = vpack.c.bf16 %v1364_v58, %v468_v53  ;;  %v1176_v60 = vpack.c.bf16 %v1364_v58, %v467_v52 }
  0xfe   : > { %v643_v61 = vsel %vm451_vm8, %v640_v57, %v642_v56  ;;  %v644_v62 = vsel %vm451_vm8, %v642_v56, %v640_v57 }
  0xff   : > { %v657_v63 = vmul.f32 %v650_v54, %v643_v61  ;;  %v658_v0 = vmul.f32 %v654_v55, %v644_v62  ;;  %1175 = vmatprep.subr.bf16.mxu0 %v1174_v59 }
 0x100   : > { %1177 = vmatpush1.bf16.msra.mxu0 %v1176_v60 }
 0x101   : > { %v1194_v16 = vpack.c.bf16 %v1364_v58, %v658_v0  ;;  %v1196_v17 = vpack.c.bf16 %v1364_v58, %v657_v63 }
 0x103   : > { %1121 = vmatmul.mubr.msk.f32.vlgmr.msra.gmra.mrb[0].mxu0 %vm705_vm9, %v661_v1  ;;  %1195 = vmatprep.subr.bf16.mxu1 %v1194_v16 }
 0x104   : > { %1197 = vmatpush1.bf16.msra.mxu1 %v1196_v17  ;;  %788 = vmatprep.mubr.f32.mxu0 %v1362_v12 }
 0x107   : > { %1122 = vmatmul.mubr.msk.f32.gmra.mrb[2].mxu0 %vm705_vm9, %v662_v7  ;;  %1125 = vmatmul.mubr.msk.f32.vlgmr.msra.gmra.mrb[0].mxu1 %vm705_vm9, %v661_v1 }
 0x108   : > { %794 = vmatprep.mubr.f32.mxu0 %v1362_v12  ;;  %877 = vmatprep.mubr.f32.mxu1 %v1362_v12 }
 0x10b   : > { %1123 = vmatmul.mubr.msk.f32.gmra.mrb[4].mxu0 %vm705_vm9, %v663_v15  ;;  %1126 = vmatmul.mubr.msk.f32.gmra.mrb[2].mxu1 %vm705_vm9, %v662_v7 }
 0x10c   : > { %800 = vmatprep.mubr.f32.mxu0 %v1362_v12  ;;  %883 = vmatprep.mubr.f32.mxu1 %v1362_v12 }
 0x10f   : > { %1124 = vmatmul.mubr.msk.f32.gmra.mrb[6].mxu0 %vm705_vm9, %v664_v6  ;;  %1127 = vmatmul.mubr.msk.f32.gmra.mrb[4].mxu1 %vm705_vm9, %v663_v15 }
 0x110   : > { %889 = vmatprep.mubr.f32.mxu1 %v1362_v12 }
 0x113   : > { %1128 = vmatmul.mubr.msk.f32.gmra.mrb[6].mxu1 %vm705_vm9, %v664_v6 }
 0x1d6   : > { %v784_v2 = vpop.f32.mrb[0].mxu0 }
 0x1d7   : > { %v912_v3 = vmin.f32 %v784_v2, 0.0  ;;  %v1660_v4 = vpop.f32.mrb[1].mxu0  ;;  %vm896_vm10 = vcmp.gt.f32.partialorder %v784_v2, 0.0 }
 0x1d8   : > { %v913_v5 = vmin.f32 %v1660_v4, 0.0  ;;  %vm897_vm11 = vcmp.gt.f32.partialorder %v1660_v4, 0.0 }
 0x1d9   : > { %v928_v8 = vmul.f32 1.442695, %v912_v3 }
 0x1da   : > { %v930_v9 = vmul.f32 1.442695, %v913_v5  ;;  %v1663_v10 = vpop.f32.mrb[2].mxu0  ;;  %v1665_v11 = vpop.f32.mrb[0].mxu1 }
 0x1db   : > { %1245 = vpow2.f32 %v928_v8  ;;  %v916_v13 = vmin.f32 %v1663_v10, 0.0  ;;  %v1668_v14 = vpop.f32.mrb[3].mxu0  ;;  %v1670_v12 = vpop.f32.mrb[1].mxu1  ;;  %v914_v18 = vmin.f32 %v1665_v11, 0.0  ;;  %vm900_vm12 = vcmp.gt.f32.partialorder %v1663_v10, 0.0 }
 0x1dc   : > { %1247 = vpow2.f32 %v930_v9  ;;  %v917_v19 = vmin.f32 %v1668_v14, 0.0  ;;  %v915_v21 = vmin.f32 %v1670_v12, 0.0  ;;  %vm898_vm13 = vcmp.gt.f32.partialorder %v1665_v11, 0.0 }
 0x1dd   : > { %v936_v20 = vmul.f32 1.442695, %v916_v13  ;;  %v932_v22 = vmul.f32 1.442695, %v914_v18  ;;  %vm901_vm14 = vcmp.gt.f32.partialorder %v1668_v14, 0.0  ;;  %vm899_vm15 = vcmp.gt.f32.partialorder %v1670_v12, 0.0 }
 0x1de   : > { %v938_v23 = vmul.f32 1.442695, %v917_v19  ;;  %v1675_v24 = vpop.f32.mrb[4].mxu0  ;;  %v1677_v25 = vpop.f32.mrb[2].mxu1  ;;  %v934_v26 = vmul.f32 1.442695, %v915_v21 }
 0x1df   : > { %1249 = vpow2.f32 %v936_v20  ;;  %v920_v27 = vmin.f32 %v1675_v24, 0.0  ;;  %v1680_v28 = vpop.f32.mrb[5].mxu0  ;;  %v1682_v29 = vpop.f32.mrb[3].mxu1  ;;  %v918_v30 = vmin.f32 %v1677_v25, 0.0  ;;  %vm904_vm0 = vcmp.gt.f32.partialorder %v1675_v24, 0.0 }
 0x1e0   : > { %1251 = vpow2.f32 %v932_v22  ;;  %v921_v32 = vmin.f32 %v1680_v28, 0.0  ;;  %v919_v34 = vmin.f32 %v1682_v29, 0.0  ;;  %vm902_vm1 = vcmp.gt.f32.partialorder %v1677_v25, 0.0 }
 0x1e1   : > { %1253 = vpow2.f32 %v938_v23  ;;  %v944_v31 = vmul.f32 1.442695, %v920_v27  ;;  %v940_v33 = vmul.f32 1.442695, %v918_v30  ;;  %vm905_vm2 = vcmp.gt.f32.partialorder %v1680_v28, 0.0 }
 0x1e2   : > { %1255 = vpow2.f32 %v934_v26  ;;  %v1687_v35 = vpop.f32.mrb[6].mxu0  ;;  %v1689_v36 = vpop.f32.mrb[4].mxu1  ;;  %v946_v37 = vmul.f32 1.442695, %v921_v32  ;;  %v942_v41 = vmul.f32 1.442695, %v919_v34 }
 0x1e3   : > { %1257 = vpow2.f32 %v944_v31  ;;  %v924_v38 = vmin.f32 %v1687_v35, 0.0  ;;  %v1693_v39 = vpop.f32.mrb[7].mxu0  ;;  %v1695_v40 = vpop.f32.mrb[5].mxu1  ;;  %v922_v42 = vmin.f32 %v1689_v36, 0.0  ;;  %vm903_vm3 = vcmp.gt.f32.partialorder %v1682_v29, 0.0 }
 0x1e4   : > { %1259 = vpow2.f32 %v940_v33  ;;  %v925_v45 = vmin.f32 %v1693_v39, 0.0  ;;  %v923_v52 = vmin.f32 %v1695_v40, 0.0  ;;  %vm908_vm4 = vcmp.gt.f32.partialorder %v1687_v35, 0.0 }
 0x1e5   : > { %v1246_v43 = vpop.eup %1245  ;;  %1261 = vpow2.f32 %v946_v37  ;;  %v952_v44 = vmul.f32 1.442695, %v924_v38  ;;  %v948_v48 = vmul.f32 1.442695, %v922_v42  ;;  %vm906_vm5 = vcmp.gt.f32.partialorder %v1689_v36, 0.0 }
 0x1e6   : > { %v1248_v46 = vpop.eup %1247  ;;  %v1129_v47 = vadd.f32 -1.0, %v1246_v43  ;;  %1263 = vpow2.f32 %v942_v41  ;;  %v1704_v49 = vpop.f32.mrb[6].mxu1  ;;  %v954_v51 = vmul.f32 1.442695, %v925_v45  ;;  %v950_v58 = vmul.f32 1.442695, %v923_v52 }
 0x1e7   : > { %v1130_v50 = vadd.f32 -1.0, %v1248_v46  ;;  %1265 = vpow2.f32 %v952_v44  ;;  %v1707_v53 = vpop.f32.mrb[7].mxu1  ;;  %v926_v55 = vmin.f32 %v1704_v49, 0.0  ;;  %vm909_vm6 = vcmp.gt.f32.partialorder %v1693_v39, 0.0 }
 0x1e8   : > { %v976_v54 = vsel %vm896_vm10, %v784_v2, %v1129_v47  ;;  %1267 = vpow2.f32 %v948_v48  ;;  %v927_v62 = vmin.f32 %v1707_v53, 0.0  ;;  %vm907_vm7 = vcmp.gt.f32.partialorder %v1695_v40, 0.0 }
 0x1e9   : > { %v1250_v56 = vpop.eup %1249  ;;  %992 = vst [vmem:[%s1702_s21] sm:$0xff] %v976_v54  ;;  %v977_v57 = vsel %vm897_vm11, %v1660_v4, %v1130_v50  ;;  %1269 = vpow2.f32 %v954_v51  ;;  %v956_v61 = vmul.f32 1.442695, %v926_v55  ;;  %vm910_vm8 = vcmp.gt.f32.partialorder %v1704_v49, 0.0 }
 0x1ea   : > { %v1252_v59 = vpop.eup %1251  ;;  %993 = vst [vmem:[%s1702_s21 + $0x8] sm:$0xff] %v977_v57  ;;  %v1133_v60 = vadd.f32 -1.0, %v1250_v56  ;;  %1271 = vpow2.f32 %v950_v58  ;;  %v958_v7 = vmul.f32 1.442695, %v927_v62  ;;  %vm911_vm9 = vcmp.gt.f32.partialorder %v1707_v53, 0.0 }
 0x1eb   : > { %v1254_v63 = vpop.eup %1253  ;;  %v1131_v0 = vadd.f32 -1.0, %v1252_v59  ;;  %1273 = vpow2.f32 %v956_v61 }
 0x1ec   : > { %v1256_v1 = vpop.eup %1255  ;;  %v980_v16 = vsel %vm900_vm12, %v1663_v10, %v1133_v60  ;;  %v1134_v17 = vadd.f32 -1.0, %v1254_v63  ;;  %1275 = vpow2.f32 %v958_v7 }
 0x1ed   : > { %v1258_v15 = vpop.eup %1257  ;;  %994 = vst [vmem:[%s1702_s21 + $0x10] sm:$0xff] %v980_v16  ;;  %v978_v6 = vsel %vm898_vm13, %v1665_v11, %v1131_v0  ;;  %v1132_v2 = vadd.f32 -1.0, %v1256_v1 }
 0x1ee   : > { %v1260_v3 = vpop.eup %1259  ;;  %1145 = vst [vmem:[%s1702_s21 + $0x40] sm:$0xff] %v978_v6  ;;  %v981_v4 = vsel %vm901_vm14, %v1668_v14, %v1134_v17  ;;  %v1137_v5 = vadd.f32 -1.0, %v1258_v15 }
 0x1ef   : > { %v1262_v8 = vpop.eup %1261  ;;  %995 = vst [vmem:[%s1702_s21 + $0x18] sm:$0xff] %v981_v4  ;;  %v979_v9 = vsel %vm899_vm15, %v1670_v12, %v1132_v2  ;;  %v1135_v10 = vadd.f32 -1.0, %v1260_v3 }
 0x1f0   : > { %v1264_v11 = vpop.eup %1263  ;;  %1146 = vst [vmem:[%s1702_s21 + $0x48] sm:$0xff] %v979_v9  ;;  %v984_v13 = vsel %vm904_vm0, %v1675_v24, %v1137_v5  ;;  %v1138_v14 = vadd.f32 -1.0, %v1262_v8 }
 0x1f1   : > { %v1266_v18 = vpop.eup %1265  ;;  %996 = vst [vmem:[%s1702_s21 + $0x20] sm:$0xff] %v984_v13  ;;  %v982_v19 = vsel %vm902_vm1, %v1677_v25, %v1135_v10  ;;  %v1136_v20 = vadd.f32 -1.0, %v1264_v11 }
 0x1f2   : > { %v1268_v12 = vpop.eup %1267  ;;  %1147 = vst [vmem:[%s1702_s21 + $0x50] sm:$0xff] %v982_v19  ;;  %v985_v21 = vsel %vm905_vm2, %v1680_v28, %v1138_v14  ;;  %v1141_v22 = vadd.f32 -1.0, %v1266_v18 }
 0x1f3   : > { %v1270_v23 = vpop.eup %1269  ;;  %997 = vst [vmem:[%s1702_s21 + $0x28] sm:$0xff] %v985_v21  ;;  %v983_v24 = vsel %vm903_vm3, %v1682_v29, %v1136_v20  ;;  %v1139_v25 = vadd.f32 -1.0, %v1268_v12 }
 0x1f4   : > { %1148 = vst [vmem:[%s1702_s21 + $0x58] sm:$0xff] %v983_v24  ;;  %v988_v26 = vsel %vm908_vm4, %v1687_v35, %v1141_v22  ;;  %v1142_v27 = vadd.f32 -1.0, %v1270_v23  ;;  %v1272_v28 = vpop.eup %1271 }
 0x1f5   : > { %998 = vst [vmem:[%s1702_s21 + $0x30] sm:$0xff] %v988_v26  ;;  %v986_v30 = vsel %vm906_vm5, %v1689_v36, %v1139_v25  ;;  %v1274_v31 = vpop.eup %1273  ;;  %v1140_v32 = vadd.f32 -1.0, %v1272_v28 }
 0x1f6   : > { %1149 = vst [vmem:[%s1702_s21 + $0x60] sm:$0xff] %v986_v30  ;;  %v989_v29 = vsel %vm909_vm6, %v1693_v39, %v1142_v27  ;;  %v1143_v33 = vadd.f32 -1.0, %v1274_v31  ;;  %v1276_v34 = vpop.eup %1275 }
 0x1f7   : > { %999 = vst [vmem:[%s1702_s21 + $0x38] sm:$0xff] %v989_v29  ;;  %v987_v35 = vsel %vm907_vm7, %v1695_v40, %v1140_v32  ;;  %v1144_v37 = vadd.f32 -1.0, %v1276_v34 }
 0x1f8   : > { %1150 = vst [vmem:[%s1702_s21 + $0x68] sm:$0xff] %v987_v35  ;;  %v990_v36 = vsel %vm910_vm8, %v1704_v49, %v1143_v33 }
 0x1f9   : > { %1151 = vst [vmem:[%s1702_s21 + $0x70] sm:$0xff] %v990_v36  ;;  %v991_v38 = vsel %vm911_vm9, %v1707_v53, %v1144_v37 }
 0x1fa   : > { %1152 = vst [vmem:[%s1702_s21 + $0x78] sm:$0xff] %v991_v38 }
 0x1fb PF: > { %s16_s15 = sadd.s32 1, %s1347_s15  }
 0x1fc   : > { %p13_p5 = scmp.ge.s32.totalorder %s16_s15, 4  }
 0x1fe   :  { %15 = sbr.rel (!%p13_p5) target bundleno = 2 (0x2), region = 88 }
 0x205   :  { %1033 = vsyncpa [#allocation4], 1 }
 0x206   :  { %1035 = vsyncpa [#allocation4 + $0x1], 1 }
 0x207   :  { %1036 = vsyncpa [#allocation6], 1 }

</bundles_post_ra>
